<compile_context>
chip_gen: v7x
topology: tpu7x:2x2x1
jax: 0.10.0
libtpu: 0.0.40
codegen_flags: <defaults>
</compile_context>

<pallas_src>
import jax
import jax.numpy as jnp
from jax import lax
from jax.experimental import pallas as pl
from jax.experimental.pallas import tpu as pltpu


def _round_up(x, m):
    return ((x + m - 1) // m) * m


def mlp_decoder_kernel(drug_ref, dis_ref,
                       w1d_ref, w1s_ref, b1_ref,
                       w2_ref, b2_ref,
                       w3row_ref, b3_ref,
                       out_ref):
    tn = drug_ref.shape[0]
    # Compute sub-chunk: keep h1/h2 temporaries vreg/VMEM friendly even when
    # the DMA tile is thousands of rows.  tn is always a multiple of 128.
    if tn % 512 == 0:
        sub = 512
    elif tn % 256 == 0:
        sub = 256
    else:
        sub = 128
    nsub = tn // sub

    # Weights/biases are VMEM-resident (constant index maps); load once.
    w1d = w1d_ref[...]          # [D, D]
    w1s = w1s_ref[...]          # [D, D]
    b1 = b1_ref[...]            # [1, D]
    w2 = w2_ref[...]            # [D, D//2]
    b2 = b2_ref[...]            # [1, D//2]
    w3row = w3row_ref[...]      # [1, D//2]
    b3 = b3_ref[...]            # [1, 1]

    def body(s, carry):
        r0 = pl.multiple_of(s * sub, sub)
        drug = drug_ref[pl.ds(r0, sub), :].astype(jnp.float32)   # [sub, D]
        dis = dis_ref[pl.ds(r0, sub), :].astype(jnp.float32)     # [sub, D]

        # mlp_1: Dropout2d identity at inference; Linear(2D -> D) + ReLU.
        # concat([drug, dis]) @ w1 == drug @ w1[:D] + dis @ w1[D:]
        h1 = (jnp.dot(drug, w1d, preferred_element_type=jnp.float32)
              + jnp.dot(dis, w1s, preferred_element_type=jnp.float32)
              + b1)
        h1 = jnp.maximum(h1, 0.0)                                # [sub, D]

        # mlp_2: Linear(D -> D//2) + ReLU.
        h2 = jnp.dot(h1, w2, preferred_element_type=jnp.float32) + b2
        h2 = jnp.maximum(h2, 0.0)                                # [sub, D//2]

        # mlp_3: Linear(D//2 -> 1) + Sigmoid, produced as a lane-dense
        # [1, sub] row: w3_row [1,D/2] contracted with h2 [sub,D/2] on axis 1.
        logits = lax.dot_general(
            w3row, h2, (((1,), (1,)), ((), ())),
            preferred_element_type=jnp.float32) + b3             # [1, sub]
        out_ref[:, pl.ds(r0, sub)] = jax.nn.sigmoid(logits).astype(out_ref.dtype)
        return carry

    lax.fori_loop(0, nsub, body, 0, unroll=True)


def mlp_decoder(drug_feature, disease_feature, params, *,
                tn_max=8192, features_bf16=False):
    """drug_feature, disease_feature: [N, input_dim] float32. Returns [N, 1]."""
    w1, b1, w2, b2, w3, b3 = params
    n, d = drug_feature.shape

    # Split the first weight so the [N, 2D] concat never hits HBM.
    w1_drug = w1[:d, :]                 # [D, D]
    w1_dis = w1[d:, :]                  # [D, D]
    w3_row = w3.reshape(1, -1)          # [1, D//2]

    if features_bf16:
        drug_feature = drug_feature.astype(jnp.bfloat16)
        disease_feature = disease_feature.astype(jnp.bfloat16)

    # Batch tiling: big tiles for DMA amortization, but padding waste bounded
    # to the sub-tile granularity (128/256/512) instead of a whole tile.
    tn_max = max(128, _round_up(int(tn_max), 128))
    n128 = _round_up(n, 128)
    if n128 <= tn_max:
        tn = n128
        n_pad = n128
    else:
        ntiles = -(-n128 // tn_max)
        target = -(-n128 // ntiles)
        gran = 512 if target >= 512 else (256 if target >= 256 else 128)
        tn = _round_up(target, gran)
        n_pad = ntiles * tn

    if n_pad != n:
        pad = n_pad - n
        drug_feature = jnp.pad(drug_feature, ((0, pad), (0, 0)))
        disease_feature = jnp.pad(disease_feature, ((0, pad), (0, 0)))

    grid = (n_pad // tn,)

    def row_spec(shape):                # tiled along the batch grid axis
        return pl.BlockSpec(shape, lambda i: (i, 0))

    def const_spec(shape):              # VMEM-resident across all grid steps
        return pl.BlockSpec(shape, lambda i: (0, 0))

    in_specs = [
        row_spec((tn, d)),                  # drug features
        row_spec((tn, d)),                  # disease features
        const_spec(w1_drug.shape), const_spec(w1_dis.shape), const_spec(b1.shape),
        const_spec(w2.shape), const_spec(b2.shape),
        const_spec(w3_row.shape), const_spec(b3.shape),
    ]
    out_spec = pl.BlockSpec((1, tn), lambda i: (0, i))   # lane-dense output row

    # Explicit VMEM budget: double-buffered feature tiles + output row +
    # resident weights + in-kernel temporaries, with headroom.  >=32 MiB covers
    # v5e's 16 MiB default scoped limit; capped below v7x's 64 MiB physical.
    feat_bytes = 2 if features_bf16 else 4
    vmem_est = (4 * tn * d * feat_bytes
                + 2 * tn * 4
                + 8 * 4 * (2 * d * d + d * (d // 2) + 4 * d)
                + 8 * 512 * d * 4)
    vmem_limit = int(min(max(32 << 20, 2 * vmem_est), 56 << 20))

    def run(dim_sem):
        return pl.pallas_call(
            mlp_decoder_kernel,
            out_shape=jax.ShapeDtypeStruct((1, n_pad), jnp.float32),
            grid=grid,
            in_specs=in_specs,
            out_specs=out_spec,
            compiler_params=pltpu.CompilerParams(
                dimension_semantics=(dim_sem,),
                vmem_limit_bytes=vmem_limit),
        )(drug_feature, disease_feature,
          w1_drug, w1_dis, b1, w2, b2, w3_row, b3)

    # Prefer CORE_PARALLEL so v7x actually splits the batch grid across its
    # 2 TensorCores; fall back to PARALLEL where it is not supported.
    out = None
    core_parallel = getattr(pltpu, "CORE_PARALLEL", None)
    if core_parallel is not None and grid[0] > 1:
        try:
            out = run(core_parallel)
        except Exception:
            out = None
    if out is None:
        out = run(pltpu.PARALLEL)

    return out[0, :n].reshape(n, 1)


def init_params(key, input_dim):
    """Deterministic init mimicking PyTorch Linear default (uniform +-1/sqrt(fan_in)).
    Weights stored as [in, out] (transposed vs. torch's [out, in])."""
    d = int(input_dim)
    dims = [(2 * d, d), (d, d // 2), (d // 2, 1)]
    params = []
    for (fan_in, fan_out) in dims:
        key, kw, kb = jax.random.split(key, 3)
        bound = 1.0 / (fan_in ** 0.5)
        w = jax.random.uniform(kw, (fan_in, fan_out), jnp.float32, -bound, bound)
        b = jax.random.uniform(kb, (1, fan_out), jnp.float32, -bound, bound)
        params.extend([w, b])
    return tuple(params)


def reference(drug_feature, disease_feature, params):
    w1, b1, w2, b2, w3, b3 = params
    x = jnp.concatenate([drug_feature, disease_feature], axis=1)
    h1 = jnp.maximum(x @ w1 + b1, 0.0)
    h2 = jnp.maximum(h1 @ w2 + b2, 0.0)
    return jax.nn.sigmoid(h2 @ w3 + b3)


if __name__ == "__main__":
    key = jax.random.PRNGKey(0)
    input_dim = 32
    batch = 8

    k_drug, k_dis, k_params = jax.random.split(key, 3)
    drug_feature = jax.random.normal(k_drug, (batch, input_dim), jnp.float32)
    disease_feature = jax.random.normal(k_dis, (batch, input_dim), jnp.float32)
    params = init_params(k_params, input_dim)

    # Small batch (single tile, single sub-chunk).
    out = jax.block_until_ready(mlp_decoder(drug_feature, disease_feature, params))
    ref = reference(drug_feature, disease_feature, params)
    assert out.shape == (batch, 1)
    assert jnp.allclose(out, ref, atol=1e-5, rtol=1e-5)

    # Larger batch, not a multiple of 128 (exercises padding + inner sub-loop).
    k2d, k2s = jax.random.split(jax.random.PRNGKey(1))
    drug2 = jax.random.normal(k2d, (1000, input_dim), jnp.float32)
    dis2 = jax.random.normal(k2s, (1000, input_dim), jnp.float32)
    out2 = jax.block_until_ready(mlp_decoder(drug2, dis2, params))
    ref2 = reference(drug2, dis2, params)
    assert out2.shape == (1000, 1)
    assert jnp.allclose(out2, ref2, atol=1e-5, rtol=1e-5)

    # Force a multi-step grid (exercises pipelining + adaptive tile size).
    out3 = jax.block_until_ready(
        mlp_decoder(drug2, dis2, params, tn_max=256))
    assert out3.shape == (1000, 1)
    assert jnp.allclose(out3, ref2, atol=1e-5, rtol=1e-5)

    # bf16 feature-input path (halves HBM read bytes); looser tolerance.
    out4 = jax.block_until_ready(
        mlp_decoder(drug2, dis2, params, features_bf16=True))
    assert out4.shape == (1000, 1)
    assert jnp.allclose(out4, ref2, atol=5e-2, rtol=5e-2)

    print("KERNEL_OK")
</pallas_src>

<mosaic_0001>
module attributes {stable_mosaic.version = 11 : i64} {
  func.func @mlp_decoder_kernel(%arg0: i32, %arg1: memref<128x32xf32, #tpu.memory_space<vmem>>, %arg2: memref<128x32xf32, #tpu.memory_space<vmem>>, %arg3: memref<32x32xf32, #tpu.memory_space<vmem>>, %arg4: memref<32x32xf32, #tpu.memory_space<vmem>>, %arg5: memref<1x32xf32, #tpu.memory_space<vmem>>, %arg6: memref<32x16xf32, #tpu.memory_space<vmem>>, %arg7: memref<1x16xf32, #tpu.memory_space<vmem>>, %arg8: memref<1x16xf32, #tpu.memory_space<vmem>>, %arg9: memref<1x1xf32, #tpu.memory_space<vmem>>, %arg10: memref<1x128xf32, #tpu.memory_space<vmem>>) attributes {dimension_semantics = [#tpu.dimension_semantics<parallel>], iteration_bounds = array<i64: 1>, scalar_prefetch = 0 : i64, scratch_operands = 0 : i64, tpu.core_type = #tpu.core_type<tc>, window_params = [{transform_indices = @transform_0, window_bounds = array<i64: 128, 32>}, {transform_indices = @transform_1, window_bounds = array<i64: 128, 32>}, {pipeline_mode = #tpu.pipeline_mode<synchronous>, transform_indices = @transform_2, window_bounds = array<i64: 32, 32>}, {pipeline_mode = #tpu.pipeline_mode<synchronous>, transform_indices = @transform_3, window_bounds = array<i64: 32, 32>}, {pipeline_mode = #tpu.pipeline_mode<synchronous>, transform_indices = @transform_4, window_bounds = array<i64: 1, 32>}, {pipeline_mode = #tpu.pipeline_mode<synchronous>, transform_indices = @transform_5, window_bounds = array<i64: 32, 16>}, {pipeline_mode = #tpu.pipeline_mode<synchronous>, transform_indices = @transform_6, window_bounds = array<i64: 1, 16>}, {pipeline_mode = #tpu.pipeline_mode<synchronous>, transform_indices = @transform_7, window_bounds = array<i64: 1, 16>}, {pipeline_mode = #tpu.pipeline_mode<synchronous>, transform_indices = @transform_8, window_bounds = array<i64: 1, 1>}, {transform_indices = @transform_9, window_bounds = array<i64: 1, 128>}]} {
    %c0 = arith.constant 0 : index
    %c0_0 = arith.constant 0 : index
    %0 = vector.load %arg3[%c0, %c0_0] : memref<32x32xf32, #tpu.memory_space<vmem>>, vector<32x32xf32>
    %c0_1 = arith.constant 0 : index
    %c0_2 = arith.constant 0 : index
    %1 = vector.load %arg4[%c0_1, %c0_2] : memref<32x32xf32, #tpu.memory_space<vmem>>, vector<32x32xf32>
    %c0_3 = arith.constant 0 : index
    %c0_4 = arith.constant 0 : index
    %2 = vector.load %arg5[%c0_3, %c0_4] : memref<1x32xf32, #tpu.memory_space<vmem>>, vector<1x32xf32>
    %c0_5 = arith.constant 0 : index
    %c0_6 = arith.constant 0 : index
    %3 = vector.load %arg6[%c0_5, %c0_6] : memref<32x16xf32, #tpu.memory_space<vmem>>, vector<32x16xf32>
    %c0_7 = arith.constant 0 : index
    %c0_8 = arith.constant 0 : index
    %4 = vector.load %arg7[%c0_7, %c0_8] : memref<1x16xf32, #tpu.memory_space<vmem>>, vector<1x16xf32>
    %c0_9 = arith.constant 0 : index
    %c0_10 = arith.constant 0 : index
    %5 = vector.load %arg8[%c0_9, %c0_10] : memref<1x16xf32, #tpu.memory_space<vmem>>, vector<1x16xf32>
    %c0_11 = arith.constant 0 : index
    %c0_12 = arith.constant 0 : index
    %6 = vector.load %arg9[%c0_11, %c0_12] : memref<1x1xf32, #tpu.memory_space<vmem>>, vector<1x1xf32>
    %c0_i32 = arith.constant 0 : i32
    %c128_i32 = arith.constant 128 : i32
    %7 = arith.muli %c0_i32, %c128_i32 : i32
    %8 = tpu.assume_multiple %7, 128 : i32
    %9 = arith.index_cast %8 : i32 to index
    %c0_13 = arith.constant 0 : index
    %10 = vector.load %arg1[%9, %c0_13] : memref<128x32xf32, #tpu.memory_space<vmem>>, vector<128x32xf32>
    %11 = arith.index_cast %8 : i32 to index
    %c0_14 = arith.constant 0 : index
    %12 = vector.load %arg2[%11, %c0_14] : memref<128x32xf32, #tpu.memory_space<vmem>>, vector<128x32xf32>
    %cst = arith.constant dense<0.000000e+00> : vector<128x32xf32>
    %13 = tpu.matmul %10, %0, %cst {dimension_numbers = #tpu.dot_dimension_numbers<[1], [0], [0], [1], [0, 0, 1, 1], [], []>} : vector<128x32xf32>, vector<32x32xf32>, vector<128x32xf32> -> vector<128x32xf32>
    %cst_15 = arith.constant dense<0.000000e+00> : vector<128x32xf32>
    %14 = tpu.matmul %12, %1, %cst_15 {dimension_numbers = #tpu.dot_dimension_numbers<[1], [0], [0], [1], [0, 0, 1, 1], [], []>} : vector<128x32xf32>, vector<32x32xf32>, vector<128x32xf32> -> vector<128x32xf32>
    %15 = arith.addf %13, %14 : vector<128x32xf32>
    %16 = vector.broadcast %2 : vector<1x32xf32> to vector<128x32xf32>
    %17 = arith.addf %15, %16 : vector<128x32xf32>
    %cst_16 = arith.constant 0.000000e+00 : f32
    %18 = vector.broadcast %cst_16 : f32 to vector<128x32xf32>
    %19 = arith.maximumf %17, %18 : vector<128x32xf32>
    %cst_17 = arith.constant dense<0.000000e+00> : vector<128x16xf32>
    %20 = tpu.matmul %19, %3, %cst_17 {dimension_numbers = #tpu.dot_dimension_numbers<[1], [0], [0], [1], [0, 0, 1, 1], [], []>} : vector<128x32xf32>, vector<32x16xf32>, vector<128x16xf32> -> vector<128x16xf32>
    %21 = vector.broadcast %4 : vector<1x16xf32> to vector<128x16xf32>
    %22 = arith.addf %20, %21 : vector<128x16xf32>
    %cst_18 = arith.constant 0.000000e+00 : f32
    %23 = vector.broadcast %cst_18 : f32 to vector<128x16xf32>
    %24 = arith.maximumf %22, %23 : vector<128x16xf32>
    %cst_19 = arith.constant dense<0.000000e+00> : vector<1x128xf32>
    %25 = tpu.matmul %5, %24, %cst_19 {dimension_numbers = #tpu.dot_dimension_numbers<[1], [1], [0], [0], [0, 0, 1, 0], [], []>} : vector<1x16xf32>, vector<128x16xf32>, vector<1x128xf32> -> vector<1x128xf32>
    %26 = vector.broadcast %6 : vector<1x1xf32> to vector<1x128xf32>
    %27 = arith.addf %25, %26 : vector<1x128xf32>
    %28 = arith.negf %27 : vector<1x128xf32>
    %29 = math.exp %28 : vector<1x128xf32>
    %cst_20 = arith.constant 1.000000e+00 : f32
    %30 = vector.broadcast %cst_20 : f32 to vector<1x128xf32>
    %31 = arith.addf %30, %29 : vector<1x128xf32>
    %32 = arith.divf %30, %31 : vector<1x128xf32>
    %c0_21 = arith.constant 0 : index
    %33 = arith.index_cast %8 : i32 to index
    %34 = vector.load %arg10[%c0_21, %33] : memref<1x128xf32, #tpu.memory_space<vmem>>, vector<1x128xf32>
    tpu.vector_store %arg10[%c0_21, %33], %32 {strides = array<i32>} : memref<1x128xf32, #tpu.memory_space<vmem>>, vector<1x128xf32>,
    %c1_i32 = arith.constant 1 : i32
    return
  }
  func.func @transform_0(%arg0: i32) -> (i32, i32) {
    %c0_i32 = arith.constant 0 : i32
    %c0_i32_0 = arith.constant 0 : i32
    return %arg0, %c0_i32 : i32, i32
  }
  func.func @transform_1(%arg0: i32) -> (i32, i32) {
    %c0_i32 = arith.constant 0 : i32
    %c0_i32_0 = arith.constant 0 : i32
    return %arg0, %c0_i32 : i32, i32
  }
  func.func @transform_2(%arg0: i32) -> (i32, i32) {
    %c0_i32 = arith.constant 0 : i32
    %c0_i32_0 = arith.constant 0 : i32
    %c0_i32_1 = arith.constant 0 : i32
    return %c0_i32, %c0_i32_0 : i32, i32
  }
  func.func @transform_3(%arg0: i32) -> (i32, i32) {
    %c0_i32 = arith.constant 0 : i32
    %c0_i32_0 = arith.constant 0 : i32
    %c0_i32_1 = arith.constant 0 : i32
    return %c0_i32, %c0_i32_0 : i32, i32
  }
  func.func @transform_4(%arg0: i32) -> (i32, i32) {
    %c0_i32 = arith.constant 0 : i32
    %c0_i32_0 = arith.constant 0 : i32
    %c0_i32_1 = arith.constant 0 : i32
    return %c0_i32, %c0_i32_0 : i32, i32
  }
  func.func @transform_5(%arg0: i32) -> (i32, i32) {
    %c0_i32 = arith.constant 0 : i32
    %c0_i32_0 = arith.constant 0 : i32
    %c0_i32_1 = arith.constant 0 : i32
    return %c0_i32, %c0_i32_0 : i32, i32
  }
  func.func @transform_6(%arg0: i32) -> (i32, i32) {
    %c0_i32 = arith.constant 0 : i32
    %c0_i32_0 = arith.constant 0 : i32
    %c0_i32_1 = arith.constant 0 : i32
    return %c0_i32, %c0_i32_0 : i32, i32
  }
  func.func @transform_7(%arg0: i32) -> (i32, i32) {
    %c0_i32 = arith.constant 0 : i32
    %c0_i32_0 = arith.constant 0 : i32
    %c0_i32_1 = arith.constant 0 : i32
    return %c0_i32, %c0_i32_0 : i32, i32
  }
  func.func @transform_8(%arg0: i32) -> (i32, i32) {
    %c0_i32 = arith.constant 0 : i32
    %c0_i32_0 = arith.constant 0 : i32
    %c0_i32_1 = arith.constant 0 : i32
    return %c0_i32, %c0_i32_0 : i32, i32
  }
  func.func @transform_9(%arg0: i32) -> (i32, i32) {
    %c0_i32 = arith.constant 0 : i32
    %c0_i32_0 = arith.constant 0 : i32
    return %c0_i32, %arg0 : i32, i32
  }
}

</mosaic_0001>

<bundles_post_ra>
// kernel: tpu_custom_call.1
= control target key start
LH: loop header
LB: loop body
LE: loop exit
PB: predicated region body
PF: predicated region fallthrough
CT: control target
= control target key end

     0   :  { %s1547_s0 = inlined_call_operand.vmem [shape: f32[128,32], index: 0, kind: input, shape index: {}]   ;;  %s1548_s1 = inlined_call_operand.vmem [shape: f32[128,32], index: 1, kind: input, shape index: {}]   ;;  %s1549_s2 = inlined_call_operand.vmem [shape: f32[32,32], index: 2, kind: input, shape index: {}]   ;;  %s1550_s3 = inlined_call_operand.vmem [shape: f32[32,32], index: 3, kind: input, shape index: {}]   ;;  %s1551_s4 = inlined_call_operand.vmem [shape: f32[1,32], index: 4, kind: input, shape index: {}]   ;;  %s1552_s5 = inlined_call_operand.vmem [shape: f32[32,16], index: 5, kind: input, shape index: {}]   ;;  %s1553_s6 = inlined_call_operand.vmem [shape: f32[1,16], index: 6, kind: input, shape index: {}]   ;;  %s1554_s7 = inlined_call_operand.vmem [shape: f32[1,16], index: 7, kind: input, shape index: {}]   ;;  %s1555_s8 = inlined_call_operand.<no memory space> [shape: f32[1,1], index: 8, kind: input, shape index: {}]   ;;  %s1556_s9 = inlined_call_operand.hbm [shape: f32[1,128], index: 9, kind: output, shape index: {}]  }
   0x1   :  { %v14_v0 = vstv %s1555_s8 }
   0x2   :  { %15 = vst [vmem:[#allocation2] sm:$0x1] %v14_v0 }
   0x3   :  { %v39_v1 = vld [vmem:[%s1550_s3] sm:$0xff]  ;;  %v40_v2 = vld [vmem:[%s1550_s3 + $0x8] sm:$0xff]  ;;  %v41_v3 = vld [vmem:[%s1550_s3 + $0x10] sm:$0xff]  ;;  %vm83_vm0 = vcmask 261120  }
   0x4   :  { %v1151_v4 = vpack.c.bf16 %v40_v2, %v39_v1  ;;  %v42_v5 = vld [vmem:[%s1550_s3 + $0x18] sm:$0xff]  ;;  %v67_v6 = vld [vmem:[%s1548_s1] sm:$0xff]  ;;  %v36_v9 = vld [vmem:[%s1549_s2 + $0x8] sm:$0xff] }
   0x5   :  { %v1155_v7 = vpack.c.bf16 %v42_v5, %v41_v3  ;;  %1028 = vmatprep.mubr.msk.f32.mxu0 %vm83_vm0, %v67_v6  ;;  %v35_v8 = vld [vmem:[%s1549_s2] sm:$0xff]  ;;  %v37_v11 = vld [vmem:[%s1549_s2 + $0x10] sm:$0xff]  ;;  %v38_v12 = vld [vmem:[%s1549_s2 + $0x18] sm:$0xff] }
   0x6   :  { %1152 = vmatprep.subr.bf16.mxu0 %v1151_v4  ;;  %v1159_v10 = vpack.c.bf16 %v36_v9, %v35_v8  ;;  %v68_v13 = vld [vmem:[%s1548_s1 + $0x8] sm:$0xff]  ;;  %v69_v14 = vld [vmem:[%s1548_s1 + $0x10] sm:$0xff]  ;;  %v1163_v15 = vpack.c.bf16 %v38_v12, %v37_v11  ;;  %v70_v16 = vld [vmem:[%s1548_s1 + $0x18] sm:$0xff] }
   0x7   :  { %1154 = vmatpush3.bf16.msra.mxu0 %v1151_v4  ;;  %v71_v17 = vld [vmem:[%s1548_s1 + $0x20] sm:$0xff]  ;;  %v45_v19 = vld [vmem:[%s1552_s5 + $0x8] sm:$0xff] }
   0x8   :  { %1156 = vmatprep.subr.bf16.mxu0 %v1155_v7  ;;  %v44_v18 = vld [vmem:[%s1552_s5] sm:$0xff] }
   0x9   :  { %v1167_v20 = vpack.c.bf16 %v45_v19, %v44_v18 }
   0xb   :  { %1158 = vmatpush3.bf16.msra.mxu0 %v1155_v7 }
   0xc   :  { %1160 = vmatprep.subr.bf16.mxu0 %v1159_v10 }
   0xe   :  { %1029 = vmatmul.mubr.msk.f32.vlgmr.msra.gmra.mrb[0].mxu0 %vm83_vm0, %v68_v13 }
   0xf   :  { %1162 = vmatpush3.bf16.msra.mxu0 %v1159_v10  ;;  %1031 = vmatprep.mubr.msk.f32.mxu0 %vm83_vm0, %v69_v14 }
  0x10   :  { %1164 = vmatprep.subr.bf16.mxu0 %v1163_v15 }
  0x11   :  { %16 = vsyncpa [#allocation4], 0  ;;  %v72_v21 = vld [vmem:[%s1548_s1 + $0x28] sm:$0xff]  ;;  %v73_v22 = vld [vmem:[%s1548_s1 + $0x30] sm:$0xff]  ;;  %1168 = vmatprep.subr.bf16.mxu1 %v1167_v20  ;;  %vm1258_vm1 = vmmov 0   ;;  %vm732_vm2 = vcmask 130048  }
  0x12   :  { %1032 = vmatmul.mubr.msk.f32.gmra.mrb[2].mxu0 %vm83_vm0, %v70_v16  ;;  %1170 = vmatpush3.bf16.msra.mxu1 %v1167_v20  ;;  %v74_v23 = vld [vmem:[%s1548_s1 + $0x38] sm:$0xff]  ;;  %v75_v24 = vld [vmem:[%s1548_s1 + $0x40] sm:$0xff]  ;;  %v76_v25 = vld [vmem:[%s1548_s1 + $0x48] sm:$0xff]  ;;  %s1261_s25 = smov [#allocation3]  }
  0x13   :  { %1034 = vmatprep.mubr.msk.f32.mxu0 %vm83_vm0, %v71_v17  ;;  %1166 = vmatpush3.bf16.msra.mxu0 %v1163_v15  ;;  %v77_v26 = vld [vmem:[%s1548_s1 + $0x50] sm:$0xff]  ;;  %v78_v27 = vld [vmem:[%s1548_s1 + $0x58] sm:$0xff]  ;;  %v79_v28 = vld [vmem:[%s1548_s1 + $0x60] sm:$0xff]  ;;  %s867_s26 = sshll.u32 %s1261_s25, 4  ;;  %s868_s26 = int_to_ptr.vmem [resolvable:$true] %s867_s26 }
  0x14   :  { %v80_v29 = vld [vmem:[%s1548_s1 + $0x68] sm:$0xff]  ;;  %v81_v30 = vld [vmem:[%s1548_s1 + $0x70] sm:$0xff]  ;;  %v82_v31 = vld [vmem:[%s1548_s1 + $0x78] sm:$0xff]  ;;  %s1237_s27 = scalar_lea.vmem %s868_s26, 32  ;;  %p1238_p1 = scmp.lt.s32.totalorder %s868_s26, %s868_s26 }
  0x15   :  { %v51_v32 = vld [vmem:[%s1547_s0] sm:$0xff]  ;;  %v52_v33 = vld [vmem:[%s1547_s0 + $0x8] sm:$0xff]  ;;  %v53_v34 = vld [vmem:[%s1547_s0 + $0x10] sm:$0xff] }
  0x16   :  { %1035 = vmatmul.mubr.msk.f32.gmra.mrb[4].mxu0 %vm83_vm0, %v72_v21  ;;  %v54_v35 = vld [vmem:[%s1547_s0 + $0x18] sm:$0xff]  ;;  %v55_v36 = vld [vmem:[%s1547_s0 + $0x20] sm:$0xff]  ;;  %v56_v37 = vld [vmem:[%s1547_s0 + $0x28] sm:$0xff] }
  0x17   :  { %1037 = vmatprep.mubr.msk.f32.mxu0 %vm83_vm0, %v73_v22  ;;  %v57_v38 = vld [vmem:[%s1547_s0 + $0x30] sm:$0xff]  ;;  %v58_v39 = vld [vmem:[%s1547_s0 + $0x38] sm:$0xff]  ;;  %v59_v40 = vld [vmem:[%s1547_s0 + $0x40] sm:$0xff] }
  0x18   :  { %v60_v41 = vld [vmem:[%s1547_s0 + $0x48] sm:$0xff]  ;;  %v61_v42 = vld [vmem:[%s1547_s0 + $0x50] sm:$0xff]  ;;  %v62_v43 = vld [vmem:[%s1547_s0 + $0x58] sm:$0xff] }
  0x19   :  { %v63_v44 = vld [vmem:[%s1547_s0 + $0x60] sm:$0xff]  ;;  %v64_v45 = vld [vmem:[%s1547_s0 + $0x68] sm:$0xff]  ;;  %v65_v46 = vld [vmem:[%s1547_s0 + $0x70] sm:$0xff] }
  0x1a   :  { %1038 = vmatmul.mubr.msk.f32.gmra.mrb[6].mxu0 %vm83_vm0, %v74_v23  ;;  %v66_v47 = vld [vmem:[%s1547_s0 + $0x78] sm:$0xff]  ;;  %v46_v48 = vld [vmem:[%s1552_s5 + $0x10] sm:$0xff]  ;;  %v907_v51 = vld [vmem:[%s1551_s4] ss:$0 sm:$0xff] }
  0x1b   :  { %1040 = vmatprep.mubr.msk.f32.mxu0 %vm83_vm0, %v75_v24  ;;  %v47_v49 = vld [vmem:[%s1552_s5 + $0x18] sm:$0xff]  ;;  %vm1504_vm3 = vmpackc.low %vm732_vm2, %vm732_vm2 }
  0x1c   :  { %v1171_v50 = vpack.c.bf16 %v47_v49, %v46_v48 }
  0x1e   :  { %1041 = vmatmul.mubr.msk.f32.gmra.mrb[8].mxu0 %vm83_vm0, %v76_v25  ;;  %1172 = vmatprep.subr.bf16.mxu1 %v1171_v50 }
  0x1f   :  { %1043 = vmatprep.mubr.msk.f32.mxu0 %vm83_vm0, %v77_v26  ;;  %1174 = vmatpush3.bf16.msra.mxu1 %v1171_v50 }
  0x22   :  { %1044 = vmatmul.mubr.msk.f32.gmra.mrb[10].mxu0 %vm83_vm0, %v78_v27 }
  0x23   :  { %1046 = vmatprep.mubr.msk.f32.mxu0 %vm83_vm0, %v79_v28 }
  0x26   :  { %1047 = vmatmul.mubr.msk.f32.gmra.mrb[12].mxu0 %vm83_vm0, %v80_v29 }
  0x27   :  { %1049 = vmatprep.mubr.msk.f32.mxu0 %vm83_vm0, %v81_v30 }
  0x2a   :  { %1050 = vmatmul.mubr.msk.f32.gmra.mrb[14].mxu0 %vm83_vm0, %v82_v31 }
  0x2b   :  { %1060 = vmatprep.mubr.msk.f32.mxu0 %vm83_vm0, %v51_v32 }
  0x2e   :  { %1061 = vmatmul.mubr.msk.f32.vlgmr.msra.gmra.mrb[0].mxu0 %vm83_vm0, %v52_v33 }
  0x2f   :  { %1063 = vmatprep.mubr.msk.f32.mxu0 %vm83_vm0, %v53_v34 }
  0x32   :  { %1064 = vmatmul.mubr.msk.f32.gmra.mrb[2].mxu0 %vm83_vm0, %v54_v35 }
  0x33   :  { %1066 = vmatprep.mubr.msk.f32.mxu0 %vm83_vm0, %v55_v36  ;;  %v1257_v36 = vmov 0.0|0.0  }
  0x34   :  { %1175 = vmatprep.subr.bf16.mxu1 %v1257_v36 }
  0x36   :  { %1067 = vmatmul.mubr.msk.f32.gmra.mrb[4].mxu0 %vm83_vm0, %v56_v37  ;;  %v1259_v37 = vmov 0.0  }
  0x37   :  { %1069 = vmatprep.mubr.msk.f32.mxu0 %vm83_vm0, %v57_v38  ;;  %v50_v38 = vld [vmem:[#allocation2] sm:$0x1] }
  0x3a   :  { %1070 = vmatmul.mubr.msk.f32.gmra.mrb[6].mxu0 %vm83_vm0, %v58_v39  ;;  %v1260_v39 = vmov 0  }
  0x3b   :  { %1072 = vmatprep.mubr.msk.f32.mxu0 %vm83_vm0, %v59_v40  ;;  %1228 = vset.pattern.permute.xlu0 %v1260_v39  ;;  %v908_v40 = vld [vmem:[%s1553_s6] ss:$0 sm:$0xff] }
  0x3c   :  { %725 = vperm.xlu0 %1228, %v50_v38  }
  0x3e   :  { %1073 = vmatmul.mubr.msk.f32.gmra.mrb[8].mxu0 %vm83_vm0, %v60_v41 }
  0x3f   :  { %1075 = vmatprep.mubr.msk.f32.mxu0 %vm83_vm0, %v61_v42 }
  0x42   :  { %1076 = vmatmul.mubr.msk.f32.gmra.mrb[10].mxu0 %vm83_vm0, %v62_v43 }
  0x43   :  { %1078 = vmatprep.mubr.msk.f32.mxu0 %vm83_vm0, %v63_v44 }
  0x46   :  { %1079 = vmatmul.mubr.msk.f32.gmra.mrb[12].mxu0 %vm83_vm0, %v64_v45 }
  0x47   :  { %1081 = vmatprep.mubr.msk.f32.mxu0 %vm83_vm0, %v65_v46 }
  0x4a   :  { %1082 = vmatmul.mubr.msk.f32.gmra.mrb[14].mxu0 %vm83_vm0, %v66_v47 }
  0xbb   :  { %v726_v39 = vpop.permute.xlu0 %725 }
 0x101   :  { %v1062_v52 = vpop.f32.mrb[0].mxu0 }
 0x102   :  { %v477_v53 = vadd.f32 %v1062_v52, %v907_v51  ;;  %v391_v54 = vpop.f32.mrb[1].mxu0 }
 0x103   :  { %v476_v55 = vadd.f32 %v907_v51, %v391_v54 }
 0x104   :  { %v493_v58 = vmax.f32 %v477_v53, 0.0 }
 0x105   :  { %v492_v56 = vmax.f32 %v476_v55, 0.0  ;;  %v1065_v57 = vpop.f32.mrb[2].mxu0 }
 0x106   :  { %v479_v59 = vadd.f32 %v1065_v57, %v907_v51  ;;  %v401_v60 = vpop.f32.mrb[3].mxu0 }
 0x107   :  { %v478_v61 = vadd.f32 %v907_v51, %v401_v60  ;;  %1092 = vmatprep.mubr.msk.f32.mxu1 %vm83_vm0, %v492_v56 }
 0x108   :  { %1093 = vmatmul.mubr.msk.f32.vlgmr.msra.gmra.mrb[0].mxu1 %vm83_vm0, %v493_v58  ;;  %v495_v0 = vmax.f32 %v479_v59, 0.0 }
 0x109   :  { %v494_v62 = vmax.f32 %v478_v61, 0.0  ;;  %v1068_v63 = vpop.f32.mrb[4].mxu0 }
 0x10a   :  { %v481_v1 = vadd.f32 %v1068_v63, %v907_v51  ;;  %v411_v2 = vpop.f32.mrb[5].mxu0 }
 0x10b   :  { %v480_v3 = vadd.f32 %v907_v51, %v411_v2  ;;  %1095 = vmatprep.mubr.msk.f32.mxu1 %vm83_vm0, %v494_v62 }
 0x10c   :  { %1096 = vmatmul.mubr.msk.f32.gmra.mrb[2].mxu1 %vm83_vm0, %v495_v0  ;;  %v497_v6 = vmax.f32 %v481_v1, 0.0 }
 0x10d   :  { %v496_v4 = vmax.f32 %v480_v3, 0.0  ;;  %v1071_v5 = vpop.f32.mrb[6].mxu0 }
 0x10e   :  { %v483_v7 = vadd.f32 %v1071_v5, %v907_v51  ;;  %v421_v8 = vpop.f32.mrb[7].mxu0 }
 0x10f   :  { %v482_v9 = vadd.f32 %v907_v51, %v421_v8  ;;  %1098 = vmatprep.mubr.msk.f32.mxu1 %vm83_vm0, %v496_v4 }
 0x110   :  { %1099 = vmatmul.mubr.msk.f32.gmra.mrb[4].mxu1 %vm83_vm0, %v497_v6  ;;  %v499_v12 = vmax.f32 %v483_v7, 0.0 }
 0x111   :  { %v498_v10 = vmax.f32 %v482_v9, 0.0  ;;  %v1074_v11 = vpop.f32.mrb[8].mxu0 }
 0x112   :  { %v485_v13 = vadd.f32 %v1074_v11, %v907_v51  ;;  %v431_v14 = vpop.f32.mrb[9].mxu0 }
 0x113   :  { %v484_v15 = vadd.f32 %v907_v51, %v431_v14  ;;  %1101 = vmatprep.mubr.msk.f32.mxu1 %vm83_vm0, %v498_v10 }
 0x114   :  { %1102 = vmatmul.mubr.msk.f32.gmra.mrb[6].mxu1 %vm83_vm0, %v499_v12  ;;  %v501_v18 = vmax.f32 %v485_v13, 0.0 }
 0x115   :  { %v500_v16 = vmax.f32 %v484_v15, 0.0  ;;  %v1077_v17 = vpop.f32.mrb[10].mxu0 }
 0x116   :  { %v487_v19 = vadd.f32 %v1077_v17, %v907_v51  ;;  %v441_v20 = vpop.f32.mrb[11].mxu0 }
 0x117   :  { %v486_v21 = vadd.f32 %v907_v51, %v441_v20  ;;  %1104 = vmatprep.mubr.msk.f32.mxu1 %vm83_vm0, %v500_v16 }
 0x118   :  { %1105 = vmatmul.mubr.msk.f32.gmra.mrb[8].mxu1 %vm83_vm0, %v501_v18  ;;  %v503_v24 = vmax.f32 %v487_v19, 0.0 }
 0x119   :  { %v502_v22 = vmax.f32 %v486_v21, 0.0  ;;  %v1080_v23 = vpop.f32.mrb[12].mxu0 }
 0x11a   :  { %v489_v25 = vadd.f32 %v1080_v23, %v907_v51  ;;  %v451_v26 = vpop.f32.mrb[13].mxu0 }
 0x11b   :  { %v488_v27 = vadd.f32 %v907_v51, %v451_v26  ;;  %1107 = vmatprep.mubr.msk.f32.mxu1 %vm83_vm0, %v502_v22 }
 0x11c   :  { %1108 = vmatmul.mubr.msk.f32.gmra.mrb[10].mxu1 %vm83_vm0, %v503_v24  ;;  %v505_v30 = vmax.f32 %v489_v25, 0.0 }
 0x11d   :  { %v504_v28 = vmax.f32 %v488_v27, 0.0  ;;  %v1083_v29 = vpop.f32.mrb[14].mxu0 }
 0x11e   :  { %v491_v31 = vadd.f32 %v1083_v29, %v907_v51  ;;  %v461_v32 = vpop.f32.mrb[15].mxu0 }
 0x11f   :  { %v490_v33 = vadd.f32 %v907_v51, %v461_v32  ;;  %1110 = vmatprep.mubr.msk.f32.mxu1 %vm83_vm0, %v504_v28 }
 0x120   :  { %1111 = vmatmul.mubr.msk.f32.gmra.mrb[12].mxu1 %vm83_vm0, %v505_v30  ;;  %v507_v35 = vmax.f32 %v491_v31, 0.0 }
 0x121   :  { %v506_v34 = vmax.f32 %v490_v33, 0.0 }
 0x123   :  { %1113 = vmatprep.mubr.msk.f32.mxu1 %vm83_vm0, %v506_v34  ;;  %v49_v34 = vld [vmem:[%s1554_s7] sm:$0x1]  ;;  %s1233_s7 = scalar_lea.vmem %s868_s26, 16 }
 0x124   :  { %1114 = vmatmul.mubr.msk.f32.gmra.mrb[14].mxu1 %vm83_vm0, %v507_v35  ;;  %v728_v35 = vlaneseq  ;;  %p1234_p0 = scmp.ne.s32.totalorder %s868_s26, %s1233_s7  ;;  %p1239_p2 = scmp.lt.s32.totalorder %s1237_s27, %s1233_s7 }
 0x125   :  { %1148 = vmatprep.mubr.msk.f32.mxu1 %vm1258_vm1, %v1259_v37 }
 0x126   :  { %v729_v37 = vshrl.u32 %v728_v35, 7  ;;  %p1240_p3 = por %p1239_p2, %p1238_p1 }
 0x128   :  { %v730_v38 = vsub.s32 0, %v729_v37  ;;  %p1241_p4 = pnand %p1240_p3, %p1234_p0 }
 0x1db   :  { %v1094_v41 = vpop.f32.mrb[0].mxu1 }
 0x1dc   :  { %v634_v42 = vadd.f32 %v1094_v41, %v908_v40  ;;  %v628_v43 = vpop.f32.mrb[1].mxu1 }
 0x1dd   :  { %v629_v44 = vadd.f32 %v908_v40, %v628_v43 }
 0x1de   :  { %v708_v45 = vmax.f32 %v634_v42, 0.0 }
 0x1df   :  { %v707_v46 = vmax.f32 %v629_v44, 0.0  ;;  %v1097_v47 = vpop.f32.mrb[2].mxu1 }
 0x1e0   :  { %v644_v48 = vadd.f32 %v1097_v47, %v908_v40  ;;  %v638_v49 = vpop.f32.mrb[3].mxu1 }
 0x1e1   :  { %v1176_v51 = vpack.c.bf16 %v708_v45, %v707_v46  ;;  %v639_v52 = vadd.f32 %v908_v40, %v638_v49 }
 0x1e2   :  { %v710_v53 = vmax.f32 %v644_v48, 0.0 }
 0x1e3   :  { %v709_v54 = vmax.f32 %v639_v52, 0.0  ;;  %v1100_v55 = vpop.f32.mrb[4].mxu1  ;;  %1178 = vmatpush3.bf16.xpose.msk.msra.mxu1 %vm1504_vm3, %v1176_v51 }
 0x1e4   :  { %v654_v56 = vadd.f32 %v1100_v55, %v908_v40  ;;  %v648_v57 = vpop.f32.mrb[5].mxu1  ;;  %1179 = vmatprep.subr.bf16.mxu1 %v1257_v36 }
 0x1e5   :  { %v1180_v58 = vpack.c.bf16 %v710_v53, %v709_v54  ;;  %v649_v59 = vadd.f32 %v908_v40, %v648_v57 }
 0x1e6   :  { %v712_v60 = vmax.f32 %v654_v56, 0.0 }
 0x1e7   :  { %v711_v61 = vmax.f32 %v649_v59, 0.0  ;;  %v1103_v62 = vpop.f32.mrb[6].mxu1 }
 0x1e8   :  { %v664_v63 = vadd.f32 %v1103_v62, %v908_v40  ;;  %v658_v0 = vpop.f32.mrb[7].mxu1 }
 0x1e9   :  { %v1184_v1 = vpack.c.bf16 %v712_v60, %v711_v61  ;;  %v659_v2 = vadd.f32 %v908_v40, %v658_v0 }
 0x1ea   :  { %v714_v3 = vmax.f32 %v664_v63, 0.0 }
 0x1eb   :  { %v713_v4 = vmax.f32 %v659_v2, 0.0  ;;  %v1106_v5 = vpop.f32.mrb[8].mxu1  ;;  %1182 = vmatpush3.bf16.xpose.msk.msra.mxu1 %vm1504_vm3, %v1180_v58 }
 0x1ec   :  { %v674_v6 = vadd.f32 %v1106_v5, %v908_v40  ;;  %v668_v7 = vpop.f32.mrb[9].mxu1  ;;  %1183 = vmatprep.subr.bf16.mxu1 %v1257_v36 }
 0x1ed   :  { %v1188_v8 = vpack.c.bf16 %v714_v3, %v713_v4  ;;  %v669_v9 = vadd.f32 %v908_v40, %v668_v7 }
 0x1ee   :  { %v716_v10 = vmax.f32 %v674_v6, 0.0 }
 0x1ef   :  { %v715_v11 = vmax.f32 %v669_v9, 0.0  ;;  %v1109_v12 = vpop.f32.mrb[10].mxu1 }
 0x1f0   :  { %v684_v13 = vadd.f32 %v1109_v12, %v908_v40  ;;  %v678_v14 = vpop.f32.mrb[11].mxu1 }
 0x1f1   :  { %v1192_v15 = vpack.c.bf16 %v716_v10, %v715_v11  ;;  %v679_v16 = vadd.f32 %v908_v40, %v678_v14 }
 0x1f2   :  { %v718_v17 = vmax.f32 %v684_v13, 0.0 }
 0x1f3   :  { %v717_v18 = vmax.f32 %v679_v16, 0.0  ;;  %v1112_v19 = vpop.f32.mrb[12].mxu1  ;;  %1186 = vmatpush3.bf16.xpose.msk.msra.mxu1 %vm1504_vm3, %v1184_v1 }
 0x1f4   :  { %v694_v20 = vadd.f32 %v1112_v19, %v908_v40  ;;  %v688_v21 = vpop.f32.mrb[13].mxu1  ;;  %1187 = vmatprep.subr.bf16.mxu1 %v1257_v36 }
 0x1f5   :  { %v1196_v22 = vpack.c.bf16 %v718_v17, %v717_v18  ;;  %v689_v23 = vadd.f32 %v908_v40, %v688_v21 }
 0x1f6   :  { %v720_v24 = vmax.f32 %v694_v20, 0.0 }
 0x1f7   :  { %v719_v25 = vmax.f32 %v689_v23, 0.0  ;;  %v1115_v26 = vpop.f32.mrb[14].mxu1 }
 0x1f8   :  { %v704_v27 = vadd.f32 %v1115_v26, %v908_v40  ;;  %v698_v28 = vpop.f32.mrb[15].mxu1 }
 0x1f9   :  { %v1200_v29 = vpack.c.bf16 %v720_v24, %v719_v25  ;;  %v699_v30 = vadd.f32 %v908_v40, %v698_v28  ;;  %v731_v40 = vrot.slane %v726_v39, %v730_v38 }
 0x1fa   :  { %v722_v31 = vmax.f32 %v704_v27, 0.0 }
 0x1fb   :  { %v721_v32 = vmax.f32 %v699_v30, 0.0  ;;  %1190 = vmatpush3.bf16.xpose.msk.msra.mxu1 %vm1504_vm3, %v1188_v8 }
 0x1fc   :  { %1191 = vmatprep.subr.bf16.mxu1 %v1257_v36 }
 0x1fd   :  { %v1204_v33 = vpack.c.bf16 %v722_v31, %v721_v32 }
 0x203   :  { %1194 = vmatpush3.bf16.xpose.msk.msra.mxu1 %vm1504_vm3, %v1192_v15 }
 0x204   :  { %1195 = vmatprep.subr.bf16.mxu1 %v1257_v36 }
 0x20b   :  { %1198 = vmatpush3.bf16.xpose.msk.msra.mxu1 %vm1504_vm3, %v1196_v22 }
 0x20c   :  { %1199 = vmatprep.subr.bf16.mxu1 %v1257_v36 }
 0x213   :  { %1202 = vmatpush3.bf16.xpose.msk.msra.mxu1 %vm1504_vm3, %v1200_v29 }
 0x214   :  { %1203 = vmatprep.subr.bf16.mxu1 %v1257_v36 }
 0x21b   :  { %1206 = vmatpush3.bf16.xpose.msk.msra.mxu1 %vm1504_vm3, %v1204_v33 }
 0x222   :  { %1149 = vmatmul.mubr.msk.f32.vlgmr.msra.gmra.mrb[16].mxu1 %vm732_vm2, %v49_v34 }
 0x2f5   :  { %v850_v41 = vpop.f32.mrb[16].mxu1 }
 0x2f6   :  { %v851_v42 = vadd.f32 %v850_v41, %v731_v40  ;;  %v1150_v43 = vpop.f32.mrb[17].mxu1 }
 0x2f8   :  { %v942_v44 = vmul.f32 -1.442695, %v851_v42 }
 0x2fa   :  { %1229 = vpow2.f32 %v942_v44 }
 0x304   :  { %v1230_v36 = vpop.eup %1229 }
 0x305   :  { %v857_v45 = vadd.f32 1.0, %v1230_v36 }
 0x307   :  { %1231 = vrcp.f32 %v857_v45 }
 0x311   :  { %v1232_v46 = vpop.eup %1231 }
 0x312   :  { %860 = vst [vmem:[#allocation3] sm:$0x1] %v1232_v46 }
 0x313   :  { %1244 = shalt.err (!%p1241_p4)
}
 0x314   :  { %s1245_s30 = scalar_lea.hbm %s1556_s9, 16 }
 0x315   :  { %p1246_p5 = scmp.ne.s32.totalorder %s1556_s9, %s1245_s30  ;;  %p1249_p6 = scmp.lt.u32.totalorder %s1245_s30, %s1556_s9 }
 0x317   :  { %p1251_p7 = pnand %p1249_p6, %p1246_p5 }
 0x319   :  { %1254 = shalt.err (!%p1251_p7)
}
 0x31a   :  { %870 = dma.vmem_to_hbm [thread:$0]  %s868_s26, 16, %s1556_s9, [#allocation4]  }
 0x31b   :  { %1255 = dma.done.wait [#allocation4], 16  }
 0x31c   :  { %1256 = vsyncadd [#allocation4], 4294967280 }
 0x31d   :  { %874 = vsyncpa [#allocation4], 1 }

</bundles_post_ra>
